<compile_context>
chip_gen: v7x
topology: tpu7x:2x2x1
jax: 0.10.0
libtpu: 0.0.40
codegen_flags: <defaults>
</compile_context>

<pallas_src>
import functools

import jax
import jax.numpy as jnp
from jax import lax
from jax.experimental import pallas as pl
from jax.experimental.pallas import tpu as pltpu


def _dice_kernel(p_ref, t_ref, o_ref, num_acc, den_acc, *,
                 smooth, d_total, tile_d, mask_tail):
    k = pl.program_id(1)

    @pl.when(k == 0)
    def _():
        num_acc[...] = jnp.zeros_like(num_acc)
        den_acc[...] = jnp.zeros_like(den_acc)

    p = p_ref[...].astype(jnp.float32)
    t = t_ref[...].astype(jnp.float32)

    if mask_tail:
        # Only emitted when D % tile_d != 0: zero out the out-of-range columns
        # of the (partial) last D tile so no wrapper-side padding is needed.
        col = k * tile_d + lax.broadcasted_iota(jnp.int32, p.shape, 1)
        valid = col < d_total
        zero = jnp.zeros_like(p)
        p = jnp.where(valid, p, zero)
        t = jnp.where(valid, t, zero)

    num_acc[...] += jnp.sum(p * t, axis=1, keepdims=True)
    den_acc[...] += jnp.sum(p + t, axis=1, keepdims=True)

    @pl.when(k == pl.num_programs(1) - 1)
    def _():
        dice = 2.0 * num_acc[...] / (den_acc[...] + jnp.float32(smooth))
        o_ref[...] = (1.0 - dice).astype(o_ref.dtype)


def binary_dice_loss(predict, target, smooth=1.0, p=2, reduction='mean',
                     tile_d=32768, vmem_input_budget_bytes=12 * 1024 * 1024):
    # `p` and `reduction` kept for signature parity with the PyTorch module,
    # whose forward() never uses `p` and always reduces with sum()/N.
    assert predict.shape[0] == target.shape[0], "predict & target batch size don't match"
    n = predict.shape[0]

    pred2d = predict.reshape(n, -1)
    targ2d = target.reshape(n, -1)
    d = pred2d.shape[1]

    # Row blocking: whole batch when small (full-extent block bypasses the
    # sublane-8 rule); multiples of 8 otherwise so blocks are (8,128)-tiled and
    # the "parallel" row axis can be split across TensorCores on v7x.
    row_block = n if n <= 8 else 8
    num_row_blocks = pl.cdiv(n, row_block)

    # Column tile: big steps amortize per-grid-step overhead (HBM-bound kernel)
    # while the double-buffered input footprint (2 inputs x 2 buffers x
    # row_block x tile_d) stays inside the VMEM budget on every generation.
    in_itemsize = pred2d.dtype.itemsize + targ2d.dtype.itemsize
    bytes_per_col = 2 * row_block * in_itemsize          # 2 pipeline buffers
    vmem_cap_cols = max(128, (vmem_input_budget_bytes // bytes_per_col) // 128 * 128)
    tile_d = max(128, (int(tile_d) // 128) * 128)
    tile_d = min(tile_d, vmem_cap_cols)

    if d <= tile_d:
        tile_d = d            # single full-extent block: no padding, no masking
        mask_tail = False
    else:
        mask_tail = (d % tile_d) != 0
    num_d_tiles = pl.cdiv(d, tile_d)

    inbuf_bytes = 2 * row_block * tile_d * in_itemsize
    vmem_limit = int(min(max(inbuf_bytes + (8 << 20), 16 << 20), 64 << 20))

    kernel = functools.partial(
        _dice_kernel, smooth=float(smooth), d_total=d, tile_d=tile_d,
        mask_tail=mask_tail)

    cost = pl.CostEstimate(
        flops=4 * n * d + 4 * n,
        transcendentals=0,
        bytes_accessed=n * d * in_itemsize + n * 4,
    )

    per_row = pl.pallas_call(
        kernel,
        out_shape=jax.ShapeDtypeStruct((n, 1), jnp.float32),
        grid_spec=pltpu.PrefetchScalarGridSpec(
            num_scalar_prefetch=0,
            grid=(num_row_blocks, num_d_tiles),
            in_specs=[
                pl.BlockSpec((row_block, tile_d), lambda i, k: (i, k)),
                pl.BlockSpec((row_block, tile_d), lambda i, k: (i, k)),
            ],
            out_specs=pl.BlockSpec((row_block, 1), lambda i, k: (i, 0)),
            scratch_shapes=[
                pltpu.VMEM((row_block, 1), jnp.float32),
                pltpu.VMEM((row_block, 1), jnp.float32),
            ],
        ),
        compiler_params=pltpu.CompilerParams(
            dimension_semantics=("parallel", "arbitrary"),
            vmem_limit_bytes=vmem_limit,
        ),
        cost_estimate=cost,
    )(pred2d, targ2d)

    # dice_loss.sum() / dice_loss.shape[0]  (the module's fixed reduction)
    return jnp.sum(per_row) / jnp.float32(n)


def _reference(predict, target, smooth=1.0):
    n = predict.shape[0]
    p2 = predict.reshape(n, -1).astype(jnp.float32)
    t2 = target.reshape(n, -1).astype(jnp.float32)
    num = jnp.sum(p2 * t2, axis=1)
    den = jnp.sum(p2, axis=1) + jnp.sum(t2, axis=1) + smooth
    dice = 2.0 * num / den
    return jnp.mean(1.0 - dice)


if __name__ == "__main__":
    key = jax.random.PRNGKey(0)
    k1, k2 = jax.random.split(key)

    # NCHW, small shapes: batch=2, channels=4, spatial=16x16
    predict = jax.nn.sigmoid(jax.random.normal(k1, (2, 4, 16, 16), dtype=jnp.float32))
    target = (jax.random.uniform(k2, (2, 4, 16, 16)) > 0.5).astype(jnp.float32)

    loss = binary_dice_loss(predict, target, smooth=1.0)
    loss = jax.block_until_ready(loss)

    ref = _reference(predict, target, smooth=1.0)
    assert jnp.allclose(loss, ref, atol=1e-5, rtol=1e-5), (loss, ref)

    print("KERNEL_OK")
</pallas_src>

<mosaic_0001>
module attributes {stable_mosaic.version = 11 : i64} {
  func.func @_dice_kernel(%arg0: i32, %arg1: i32, %arg2: memref<2x1024xf32, #tpu.memory_space<vmem>>, %arg3: memref<2x1024xf32, #tpu.memory_space<vmem>>, %arg4: memref<2x1xf32, #tpu.memory_space<vmem>>, %arg5: memref<2x1xf32, #tpu.memory_space<vmem>>, %arg6: memref<2x1xf32, #tpu.memory_space<vmem>>) attributes {dimension_semantics = [#tpu.dimension_semantics<parallel>, #tpu.dimension_semantics<arbitrary>], iteration_bounds = array<i64: 1, 1>, scalar_prefetch = 0 : i64, scratch_operands = 2 : i64, tpu.core_type = #tpu.core_type<tc>, window_params = [{transform_indices = @transform_0, window_bounds = array<i64: 2, 1024>}, {transform_indices = @transform_1, window_bounds = array<i64: 2, 1024>}, {transform_indices = @transform_2, window_bounds = array<i64: 2, 1>}]} {
    %c0_i32 = arith.constant 0 : i32
    %0 = arith.cmpi eq, %arg1, %c0_i32 : i32
    %1 = arith.extui %0 : i1 to i32
    %c0_i32_0 = arith.constant 0 : i32
    %2 = arith.cmpi ne, %1, %c0_i32_0 : i32
    scf.if %2 {
      %cst_15 = arith.constant 0.000000e+00 : f32
      %20 = vector.broadcast %cst_15 : f32 to vector<2x1xf32>
      %c0_16 = arith.constant 0 : index
      %c0_17 = arith.constant 0 : index
      %21 = vector.load %arg5[%c0_16, %c0_17] : memref<2x1xf32, #tpu.memory_space<vmem>>, vector<2x1xf32>
      tpu.vector_store %arg5[%c0_16, %c0_17], %20 {strides = array<i32>} : memref<2x1xf32, #tpu.memory_space<vmem>>, vector<2x1xf32>,
      %cst_18 = arith.constant 0.000000e+00 : f32
      %22 = vector.broadcast %cst_18 : f32 to vector<2x1xf32>
      %c0_19 = arith.constant 0 : index
      %c0_20 = arith.constant 0 : index
      %23 = vector.load %arg6[%c0_19, %c0_20] : memref<2x1xf32, #tpu.memory_space<vmem>>, vector<2x1xf32>
      tpu.vector_store %arg6[%c0_19, %c0_20], %22 {strides = array<i32>} : memref<2x1xf32, #tpu.memory_space<vmem>>, vector<2x1xf32>,
    } else {
    }
    %c0 = arith.constant 0 : index
    %c0_1 = arith.constant 0 : index
    %3 = vector.load %arg2[%c0, %c0_1] : memref<2x1024xf32, #tpu.memory_space<vmem>>, vector<2x1024xf32>
    %c0_2 = arith.constant 0 : index
    %c0_3 = arith.constant 0 : index
    %4 = vector.load %arg3[%c0_2, %c0_3] : memref<2x1024xf32, #tpu.memory_space<vmem>>, vector<2x1024xf32>
    %c0_4 = arith.constant 0 : index
    %c0_5 = arith.constant 0 : index
    %5 = vector.load %arg5[%c0_4, %c0_5] : memref<2x1xf32, #tpu.memory_space<vmem>>, vector<2x1xf32>
    %6 = arith.mulf %3, %4 : vector<2x1024xf32>
    %cst = arith.constant dense<0.000000e+00> : vector<2xf32>
    %7 = vector.multi_reduction <add>, %6, %cst [1] : vector<2x1024xf32> to vector<2xf32>
    %8 = vector.shape_cast %7 : vector<2xf32> to vector<2x1xf32>
    %9 = arith.addf %5, %8 : vector<2x1xf32>
    %c0_6 = arith.constant 0 : index
    %c0_7 = arith.constant 0 : index
    %10 = vector.load %arg5[%c0_6, %c0_7] : memref<2x1xf32, #tpu.memory_space<vmem>>, vector<2x1xf32>
    tpu.vector_store %arg5[%c0_6, %c0_7], %9 {strides = array<i32>} : memref<2x1xf32, #tpu.memory_space<vmem>>, vector<2x1xf32>,
    %c0_8 = arith.constant 0 : index
    %c0_9 = arith.constant 0 : index
    %11 = vector.load %arg6[%c0_8, %c0_9] : memref<2x1xf32, #tpu.memory_space<vmem>>, vector<2x1xf32>
    %12 = arith.addf %3, %4 : vector<2x1024xf32>
    %cst_10 = arith.constant dense<0.000000e+00> : vector<2xf32>
    %13 = vector.multi_reduction <add>, %12, %cst_10 [1] : vector<2x1024xf32> to vector<2xf32>
    %14 = vector.shape_cast %13 : vector<2xf32> to vector<2x1xf32>
    %15 = arith.addf %11, %14 : vector<2x1xf32>
    %c0_11 = arith.constant 0 : index
    %c0_12 = arith.constant 0 : index
    %16 = vector.load %arg6[%c0_11, %c0_12] : memref<2x1xf32, #tpu.memory_space<vmem>>, vector<2x1xf32>
    tpu.vector_store %arg6[%c0_11, %c0_12], %15 {strides = array<i32>} : memref<2x1xf32, #tpu.memory_space<vmem>>, vector<2x1xf32>,
    %c0_i32_13 = arith.constant 0 : i32
    %17 = arith.cmpi eq, %arg1, %c0_i32_13 : i32
    %18 = arith.extui %17 : i1 to i32
    %c0_i32_14 = arith.constant 0 : i32
    %19 = arith.cmpi ne, %18, %c0_i32_14 : i32
    scf.if %19 {
      %c0_15 = arith.constant 0 : index
      %c0_16 = arith.constant 0 : index
      %20 = vector.load %arg5[%c0_15, %c0_16] : memref<2x1xf32, #tpu.memory_space<vmem>>, vector<2x1xf32>
      %cst_17 = arith.constant 2.000000e+00 : f32
      %21 = vector.broadcast %cst_17 : f32 to vector<2x1xf32>
      %22 = arith.mulf %21, %20 : vector<2x1xf32>
      %c0_18 = arith.constant 0 : index
      %c0_19 = arith.constant 0 : index
      %23 = vector.load %arg6[%c0_18, %c0_19] : memref<2x1xf32, #tpu.memory_space<vmem>>, vector<2x1xf32>
      %cst_20 = arith.constant 1.000000e+00 : f32
      %24 = vector.broadcast %cst_20 : f32 to vector<2x1xf32>
      %25 = arith.addf %23, %24 : vector<2x1xf32>
      %26 = arith.divf %22, %25 : vector<2x1xf32>
      %cst_21 = arith.constant 1.000000e+00 : f32
      %27 = vector.broadcast %cst_21 : f32 to vector<2x1xf32>
      %28 = arith.subf %27, %26 : vector<2x1xf32>
      %c0_22 = arith.constant 0 : index
      %c0_23 = arith.constant 0 : index
      %29 = vector.load %arg4[%c0_22, %c0_23] : memref<2x1xf32, #tpu.memory_space<vmem>>, vector<2x1xf32>
      tpu.vector_store %arg4[%c0_22, %c0_23], %28 {strides = array<i32>} : memref<2x1xf32, #tpu.memory_space<vmem>>, vector<2x1xf32>,
    } else {
    }
    return
  }
  func.func @transform_0(%arg0: i32, %arg1: i32) -> (i32, i32) {
    %c0_i32 = arith.constant 0 : i32
    return %arg0, %arg1 : i32, i32
  }
  func.func @transform_1(%arg0: i32, %arg1: i32) -> (i32, i32) {
    %c0_i32 = arith.constant 0 : i32
    return %arg0, %arg1 : i32, i32
  }
  func.func @transform_2(%arg0: i32, %arg1: i32) -> (i32, i32) {
    %c0_i32 = arith.constant 0 : i32
    %c0_i32_0 = arith.constant 0 : i32
    return %arg0, %c0_i32 : i32, i32
  }
}

</mosaic_0001>

<bundles_post_ra>
// kernel: tpu_custom_call.1
= control target key start
LH: loop header
LB: loop body
LE: loop exit
PB: predicated region body
PF: predicated region fallthrough
CT: control target
= control target key end

     0   :  { %7 = vsyncpa [#allocation5], 0  ;;  %s318_s0 = inlined_call_operand.hbm [shape: f32[2,1024], index: 0, kind: input, shape index: {}]   ;;  %s319_s1 = inlined_call_operand.hbm [shape: f32[2,1024], index: 1, kind: input, shape index: {}]   ;;  %s320_s2 = inlined_call_operand.vmem [shape: f32[2,1], index: 2, kind: output, shape index: {}]  }
   0x1   :  { %8 = vsyncpa [#allocation7], 0  ;;  %s251_s9 = smov [#allocation4]   ;;  %s252_s11 = smov [#allocation6]  }
   0x2   :  { %s15_s10 = sshll.u32 %s251_s9, 4  ;;  %s25_s12 = sshll.u32 %s252_s11, 4  ;;  %s16_s10 = int_to_ptr.vmem [resolvable:$true] %s15_s10  ;;  %s26_s12 = int_to_ptr.vmem [resolvable:$true] %s25_s12 }
   0x3   :  { %s203_s15 = scalar_lea.hbm %s318_s0, 256 }
   0x4   :  { %p204_p0 = scmp.ne.s32.totalorder %s318_s0, %s203_s15  ;;  %p207_p1 = scmp.lt.u32.totalorder %s203_s15, %s318_s0 }
   0x6   :  { %p209_p2 = pnand %p207_p1, %p204_p0 }
   0x8   :  { %212 = shalt.err (!%p209_p2)
}
   0x9   :  { %s213_s20 = scalar_lea.vmem %s16_s10, 256  ;;  %p218_p4 = scmp.lt.s32.totalorder %s16_s10, %s16_s10 }
   0xa   :  { %p214_p3 = scmp.ne.s32.totalorder %s16_s10, %s213_s20  ;;  %p219_p5 = scmp.lt.s32.totalorder %s213_s20, %s213_s20 }
   0xc   :  { %p220_p6 = por %p219_p5, %p218_p4 }
   0xe   :  { %p221_p7 = pnand %p220_p6, %p214_p3 }
  0x10   :  { %224 = shalt.err (!%p221_p7)
}
  0x11   :  { %18 = dma.hbm_to_vmem [thread:$0]  %s318_s0, 256, %s16_s10, [#allocation5]  }
  0x12   :  { %s225_s25 = scalar_lea.hbm %s319_s1, 256 }
  0x13   :  { %p226_p8 = scmp.ne.s32.totalorder %s319_s1, %s225_s25  ;;  %p229_p9 = scmp.lt.u32.totalorder %s225_s25, %s319_s1 }
  0x15   :  { %p231_p10 = pnand %p229_p9, %p226_p8 }
  0x17   :  { %234 = shalt.err (!%p231_p10)
}
  0x18   :  { %s235_s30 = scalar_lea.vmem %s26_s12, 256  ;;  %p240_p12 = scmp.lt.s32.totalorder %s26_s12, %s26_s12 }
  0x19   :  { %p236_p11 = scmp.ne.s32.totalorder %s26_s12, %s235_s30  ;;  %p241_p13 = scmp.lt.s32.totalorder %s235_s30, %s235_s30 }
  0x1b   :  { %p242_p0 = por %p241_p13, %p240_p12 }
  0x1d   :  { %p243_p1 = pnand %p242_p0, %p236_p11 }
  0x1f   :  { %246 = shalt.err (!%p243_p1)
}
  0x20   :  { %28 = dma.hbm_to_vmem [thread:$0]  %s319_s1, 256, %s26_s12, [#allocation7]  }
  0x21   :  { %247 = dma.done.wait [#allocation5], 256  }
  0x22   :  { %248 = vsyncadd [#allocation5], 4294967040 }
  0x23   :  { %249 = dma.done.wait [#allocation7], 256  }
  0x24   :  { %250 = vsyncadd [#allocation7], 4294967040  ;;  %v55_v0 = vlaneseq  ;;  %vm39_vm0 = vcmask 1024   ;;  %v253_v1 = vmov 1983009808   ;;  %v254_v4 = vmov 0.0  }
  0x25   :  { %v53_v2 = vunpack.c.l.s4 %v253_v1  ;;  %41 = vst.msk [vmem:[#allocation3] sm:$0x3] %vm39_vm0, %v254_v4  ;;  %40 = vst.msk [vmem:[#allocation2] sm:$0x3] %vm39_vm0, %v254_v4  ;;  %v42_v7 = vld [vmem:[#allocation4] sm:$0xff]  ;;  %v43_v8 = vld [vmem:[#allocation4 + $0x8] sm:$0xff] }
  0x26   :  { %v56_v3 = vshrl.u32 %v55_v0, 7  ;;  %v44_v9 = vld [vmem:[#allocation6] sm:$0xff]  ;;  %v45_v10 = vld [vmem:[#allocation6 + $0x8] sm:$0xff]  ;;  %vm93_vm1 = vcmask 1041408  }
  0x27   :  { %v54_v5 = vunpack.c.0.s8 %v53_v2  ;;  %v115_v11 = vadd.f32 %v44_v9, %v42_v7  ;;  %v47_v12 = vmul.f32 %v44_v9, %v42_v7  ;;  %v116_v13 = vadd.f32 %v45_v10, %v43_v8 }
  0x28   :  { %v48_v20 = vmul.f32 %v45_v10, %v43_v8 }
  0x29   :  { %v57_v6 = vsub.s32 %v54_v5, %v56_v3  ;;  %v119_v14 = vcombine.high %v115_v11, %v115_v11  ;;  %v51_v16 = vcombine.high %v47_v12, %v47_v12  ;;  %v136_v18 = vcombine.high %v116_v13, %v116_v13 }
  0x2a   :  { %v68_v31 = vcombine.high %v48_v20, %v48_v20 }
  0x2b   :  { %v126_v15 = vrot.slane %v115_v11, %v57_v6  ;;  %v58_v17 = vrot.slane %v47_v12, %v57_v6  ;;  %v143_v19 = vrot.slane %v116_v13, %v57_v6  ;;  %v133_v21 = vrot.slane %v119_v14, %v57_v6 }
  0x2c   :  { %v65_v24 = vrot.slane %v51_v16, %v57_v6  ;;  %v75_v32 = vrot.slane %v48_v20, %v57_v6  ;;  %v150_v33 = vrot.slane %v136_v18, %v57_v6  ;;  %v82_v43 = vrot.slane %v68_v31, %v57_v6  ;;  %v114_v1 = vld [vmem:[#allocation3] sm:$0x3]  ;;  %v46_v4 = vld [vmem:[#allocation2] sm:$0x3] }
  0x2d   :  { %v134_v22 = vcombine.high %v126_v15, %v126_v15  ;;  %v161_v23 = vsel %vm93_vm1, %v126_v15, 0.0  ;;  %v66_v25 = vcombine.high %v58_v17, %v58_v17  ;;  %v135_v26 = vcombine.high %v133_v21, %v133_v21 }
  0x2e   :  { %v164_v28 = vsel %vm93_vm1, %v133_v21, 0.0  ;;  %v67_v30 = vcombine.high %v65_v24, %v65_v24  ;;  %v151_v34 = vcombine.high %v143_v19, %v143_v19  ;;  %v94_v36 = vsel %vm93_vm1, %v58_v17, 0.0 }
  0x2f   :  { %v162_v27 = vsel %vm93_vm1, %v134_v22, 0.0  ;;  %v166_v35 = vsel %vm93_vm1, %v135_v26, 0.0  ;;  %v95_v38 = vsel %vm93_vm1, %v66_v25, 0.0  ;;  %v97_v39 = vsel %vm93_vm1, %v65_v24, 0.0 }
  0x30   :  { %v163_v29 = vadd.f32 %v162_v27, %v161_v23  ;;  %v168_v40 = vsel %vm93_vm1, %v143_v19, 0.0  ;;  %v96_v41 = vadd.f32 %v95_v38, %v94_v36  ;;  %v83_v44 = vcombine.high %v75_v32, %v75_v32 }
  0x31   :  { %v99_v45 = vsel %vm93_vm1, %v67_v30, 0.0  ;;  %v152_v46 = vcombine.high %v150_v33, %v150_v33  ;;  %v170_v47 = vsel %vm93_vm1, %v151_v34, 0.0  ;;  %v101_v50 = vsel %vm93_vm1, %v75_v32, 0.0 }
  0x32   :  { %v165_v37 = vadd.f32 %v164_v28, %v163_v29  ;;  %v98_v48 = vadd.f32 %v97_v39, %v96_v41  ;;  %v172_v51 = vsel %vm93_vm1, %v150_v33, 0.0  ;;  %v84_v54 = vcombine.high %v82_v43, %v82_v43 }
  0x33   :  { %v103_v55 = vsel %vm93_vm1, %v83_v44, 0.0  ;;  %v174_v56 = vsel %vm93_vm1, %v152_v46, 0.0  ;;  %v105_v59 = vsel %vm93_vm1, %v82_v43, 0.0 }
  0x34   :  { %v167_v42 = vadd.f32 %v166_v35, %v165_v37  ;;  %v100_v52 = vadd.f32 %v99_v45, %v98_v48  ;;  %v107_v62 = vsel %vm93_vm1, %v84_v54, 0.0 }
  0x36   :  { %v169_v49 = vadd.f32 %v168_v40, %v167_v42  ;;  %v102_v57 = vadd.f32 %v101_v50, %v100_v52 }
  0x38   :  { %v171_v53 = vadd.f32 %v170_v47, %v169_v49  ;;  %v104_v60 = vadd.f32 %v103_v55, %v102_v57 }
  0x3a   :  { %v173_v58 = vadd.f32 %v172_v51, %v171_v53  ;;  %v106_v63 = vadd.f32 %v105_v59, %v104_v60 }
  0x3c   :  { %v175_v61 = vadd.f32 %v174_v56, %v173_v58  ;;  %v108_v0 = vadd.f32 %v107_v62, %v106_v63 }
  0x3e   :  { %176 = vadd.xlane.f32.xlu0 %v175_v61 }
  0x42   :  { %109 = vadd.xlane.f32.xlu0 %v108_v0 }
  0xcb   :  { %v177_v2 = vpop.xlane.xlu0 %176 }
  0xcc   :  { %v178_v3 = vadd.f32 %v177_v2, %v114_v1 }
  0xce   :  { %179 = vst.msk [vmem:[#allocation3] sm:$0x3] %vm39_vm0, %v178_v3 }
  0xcf   :  { %v110_v5 = vpop.xlane.xlu0 %109 }
  0xd0   :  { %v111_v6 = vadd.f32 %v110_v5, %v46_v4 }
  0xd2   :  { %113 = vst.msk [vmem:[#allocation2] sm:$0x3] %vm39_vm0, %v111_v6 }
  0xd5   :  { %v185_v7 = vld [vmem:[#allocation3] sm:$0x3] }
  0xd6   :  { %v186_v8 = vadd.f32 1.0, %v185_v7 }
  0xd8   :  { %201 = vrcp.f32 %v186_v8 }
  0xd9   :  { %v183_v9 = vld [vmem:[#allocation2] sm:$0x3] }
  0xda   :  { %v184_v10 = vmul.f32 2.0, %v183_v9 }
  0xe2   :  { %v202_v11 = vpop.eup %201 }
  0xe3   :  { %v188_v12 = vmul.f32 %v202_v11, %v184_v10 }
  0xe5   :  { %v189_v13 = vsub.f32 1.0, %v188_v12 }
  0xe7   :  { %190 = vst.msk [vmem:[%s320_s2] sm:$0x3] %vm39_vm0, %v189_v13 }
  0xe8   :  { %195 = vsyncpa [#allocation5], 1 }
  0xe9   :  { %196 = vsyncpa [#allocation7], 1 }

</bundles_post_ra>
